<compile_context>
chip_gen: v7x
topology: tpu7x:2x2x1
jax: 0.10.0
libtpu: 0.0.40
codegen_flags: <defaults>
</compile_context>

<pallas_src>
import functools

import jax
import jax.numpy as jnp
from jax import lax
from jax.experimental import pallas as pl
from jax.experimental.pallas import tpu as pltpu

# float8_e4m3fn finfo
FP8_MAX = 448.0
FP8_MIN = -448.0
EPS = 1e-12
_VMEM_LIMIT = 32 * 1024 * 1024   # lifts v5e's 16 MiB scoped default; neutral on v6e/v7x


def _mxu_native_fp8():
    """True when the MXU consumes fp8 natively (v7x). Conservative device_kind gate."""
    try:
        kind = jax.devices()[0].device_kind.lower()
    except Exception:
        return False
    return ("v7" in kind) or ("7x" in kind)


def _pick_tile(dim, candidates):
    """Largest candidate tile that evenly divides `dim`, else the full dim.

    Inputs are pre-padded to multiples of the smallest candidate (8 / 32 / 128),
    so the full-dim fallback can never produce an oversized monolithic block.
    """
    for c in candidates:
        if c <= dim and dim % c == 0:
            return c
    return dim


def _pad_to(a, multiples):
    """Zero-pad each dim of `a` up to a multiple of `multiples[d]` (no-op if aligned)."""
    pads = tuple((0, (-d) % m) for d, m in zip(a.shape, multiples))
    if all(p[1] == 0 for p in pads):
        return a
    return jnp.pad(a, pads)


# ----------------------------- Pallas kernels ------------------------------ #

def _absmax_kernel(x_ref, amax_ref, vmax_ref):
    """Tiled global |x| max.

    Per tile: elementwise running max into a VMEM scratch (pure VPU, no XLU).
    Final step: one cross-lane reduce + scalar store to SMEM.
    NOTE: the running VMEM/SMEM state requires BOTH grid axes to stay "arbitrary"
    (sequential); do not mark them "parallel".
    """
    i = pl.program_id(0)
    j = pl.program_id(1)

    @pl.when((i == 0) & (j == 0))
    def _():
        vmax_ref[...] = jnp.zeros_like(vmax_ref)

    vmax_ref[...] = jnp.maximum(vmax_ref[...], jnp.abs(x_ref[...]).astype(jnp.float32))

    @pl.when((i == pl.num_programs(0) - 1) & (j == pl.num_programs(1) - 1))
    def _():
        amax_ref[0, 0] = jnp.max(vmax_ref[...])
    # TODO(synk): on v7x, split this reduction across the two TensorCores (per-core
    # partial maxes combined in the wrapper) instead of a single sequential pass.


def _scaled_mm_kernel(scale_ref, x_ref, w_ref, *rest, native_fp8):
    """Scaled fp8 matmul tile with K-axis accumulation.

    scale_ref : SMEM (1,) float32 = scale_a_inv * scale_b (combined dequant scale)
    x_ref     : (TM, TK) quantized activation tile
                  - float8_e4m3fn on v7x (fed straight to the MXU)
                  - bf16 carrier of fp8 values elsewhere (no in-kernel act convert)
    w_ref     : (TN, TK) float8_e4m3fn weight tile (N-major, K contracted)
    rest      : [bias_ref (1, TN) f32]? , out_ref (TM, TN), acc_ref (TM, TN) f32
    """
    if len(rest) == 3:
        bias_ref, out_ref, acc_ref = rest
    else:
        bias_ref = None
        out_ref, acc_ref = rest

    k = pl.program_id(2)

    @pl.when(k == 0)
    def _():
        acc_ref[...] = jnp.zeros_like(acc_ref)

    if native_fp8:
        # v7x: native fp8 MXU — no operand conversion at all.
        x = x_ref[...]
        w = w_ref[...]
    else:
        # v5e/v6e: activation already arrives as bf16 (exact fp8 carrier); only the
        # fp8 weight tile is upcast in-kernel (weights stay fp8 in HBM).
        x = x_ref[...]
        w = w_ref[...].astype(jnp.bfloat16)

    acc_ref[...] += lax.dot_general(
        x, w,
        dimension_numbers=(((1,), (1,)), ((), ())),   # contract K of both; no .T
        preferred_element_type=jnp.float32)

    @pl.when(k == pl.num_programs(2) - 1)
    def _():
        out = acc_ref[...] * scale_ref[0]
        if bias_ref is not None:
            out = out + bias_ref[...]                 # (1, TN) broadcasts over (TM, TN)
        out_ref[...] = out.astype(out_ref.dtype)
    # TODO(synk): if profiling on v6e shows exposed weight DMA, set
    # pipeline_mode=pl.Buffered(3) on the weight BlockSpec.


# ------------------------------- JAX glue ---------------------------------- #

def fp8_quantize(weight, scale_upper_bound=None):
    """Per-tensor fp8-e4m3fn quantization (the `scalar=True` path of the torch ref).

    Returns (qweight: float8_e4m3fn, scale: float32 scalar == 1/quant_scale).
    """
    w32 = weight.astype(jnp.float32)
    amax = jnp.max(jnp.abs(w32))
    if scale_upper_bound is not None:
        amax = jnp.clip(amax, EPS, scale_upper_bound)
    else:
        amax = jnp.maximum(amax, EPS)
    scale = FP8_MAX / amax
    qweight = jnp.clip(w32 * scale, FP8_MIN, FP8_MAX).astype(jnp.float8_e4m3fn)
    return qweight, (1.0 / scale).astype(jnp.float32)


def fp8_linear_init(weight, bias=None):
    """Fp8Linear.from_unquant: quantize + hoist all per-forward packaging to init.

    Pads the (N, K) weight to multiples of 128 BEFORE quantization (zero padding
    does not change the abs-max / scale) and prepares the f32 (1, Np) bias row.
    """
    N, K = weight.shape
    w_pad = _pad_to(weight.astype(jnp.float32), (128, 128))
    qweight_p, w_scale = fp8_quantize(w_pad)
    bias_row = None
    if bias is not None:
        bias_row = _pad_to(bias.astype(jnp.float32).reshape(1, N), (1, 128))
    return qweight_p, w_scale, bias_row, N


def _activation_absmax(x):
    """Global abs-max of the (padded) activation via a tiled Pallas reduction."""
    M, K = x.shape
    tm = _pick_tile(M, (256, 128, 64, 32, 16, 8))
    tk = _pick_tile(K, (2048, 1024, 512, 256, 128))
    amax = pl.pallas_call(
        _absmax_kernel,
        grid=(M // tm, K // tk),
        out_shape=jax.ShapeDtypeStruct((1, 1), jnp.float32),
        in_specs=[pl.BlockSpec((tm, tk), lambda i, j: (i, j))],
        out_specs=pl.BlockSpec(memory_space=pltpu.MemorySpace.SMEM),
        scratch_shapes=[pltpu.VMEM((tm, tk), jnp.float32)],
        compiler_params=pltpu.CompilerParams(
            # Must stay sequential: running-max scratch + SMEM scalar.
            dimension_semantics=("arbitrary", "arbitrary"),
            vmem_limit_bytes=_VMEM_LIMIT),
    )(x)
    return amax[0, 0]


def fp8_linear_forward(x, qweight_p, w_scale, bias_row=None, out_features=None,
                       out_dtype=jnp.bfloat16,
                       block_m=None, block_n=None, block_k=None):
    """Forward pass of Fp8Linear (non-FBGEMM path) using Pallas TPU kernels."""
    M, K = x.shape
    Np, Kp = qweight_p.shape
    N = Np if out_features is None else out_features
    native_fp8 = _mxu_native_fp8()

    # ---- 0) pad the activation so every tile candidate divides cleanly ----
    m_align = 32 if native_fp8 else 8         # fp8 sublane packing needs 32 on v7x
    xp = _pad_to(x, (m_align, 128))
    Mp, Kp_x = xp.shape
    assert Kp_x == Kp, "in_features mismatch (after 128-padding)"

    # ---- 1) global abs-max of the activation (tiled Pallas reduction) ----
    amax = jnp.maximum(_activation_absmax(xp), EPS)

    # ---- 2) dynamic per-tensor fp8 quantization of the activation ----
    # One fused XLA elementwise pass. On v5e/v6e the fp8 values are re-expanded to a
    # bf16 carrier (exact) so the matmul kernel does zero activation conversion; on
    # v7x the fp8 array itself is streamed into the MXU.
    # TODO(synk): fuse this quantize pass into the matmul kernel (in-kernel
    # round-to-fp8) to drop one launch + the activation HBM round-trip; kept in the
    # wrapper because in-kernel bf16->fp8 rounding is not guaranteed to lower on v5e.
    scale_a = FP8_MAX / amax
    q = jnp.clip(xp.astype(jnp.float32) * scale_a,
                 FP8_MIN, FP8_MAX).astype(jnp.float8_e4m3fn)
    qx = q if native_fp8 else q.astype(jnp.bfloat16)
    scale_prod = ((1.0 / scale_a) * w_scale).astype(jnp.float32).reshape(1)

    # ---- 3) tile selection (decode vs prefill) ----
    if Mp <= 64:
        # Decode: purely weight-HBM bound — use multi-MiB weight tiles.
        tm = Mp
        tn = _pick_tile(Np, (512, 256, 128))
        tk = Kp if Kp <= 4096 else _pick_tile(Kp, (4096, 2048, 1024, 512, 256, 128))
    else:
        # Prefill: bigger M/N tiles cut weight re-reads; fits all generations.
        tm = _pick_tile(Mp, (512, 256, 128, 64, 32, 16, 8))
        tn = _pick_tile(Np, (512, 256, 128))
        tk = _pick_tile(Kp, (2048, 1024, 512, 256, 128))
    if block_m is not None:
        tm = block_m
    if block_n is not None:
        tn = block_n
    if block_k is not None:
        tk = block_k
    assert Mp % tm == 0 and Np % tn == 0 and Kp % tk == 0
    grid = (Mp // tm, Np // tn, Kp // tk)

    # ---- 4) scaled fp8 matmul + bias + cast, tiled over (M, N, K) ----
    in_specs = [
        pl.BlockSpec(memory_space=pltpu.MemorySpace.SMEM),   # scale_prod (1,)
        pl.BlockSpec((tm, tk), lambda i, j, k: (i, k)),      # activation tile
        pl.BlockSpec((tn, tk), lambda i, j, k: (j, k)),      # fp8 weight tile (N, K)
    ]
    operands = [scale_prod, qx, qweight_p]
    if bias_row is not None:                                 # static branch: no ref/DMA if None
        in_specs.append(pl.BlockSpec((1, tn), lambda i, j, k: (0, j)))
        operands.append(bias_row)

    out = pl.pallas_call(
        functools.partial(_scaled_mm_kernel, native_fp8=native_fp8),
        grid=grid,
        out_shape=jax.ShapeDtypeStruct((Mp, Np), out_dtype),
        in_specs=in_specs,
        out_specs=pl.BlockSpec((tm, tn), lambda i, j, k: (i, j)),
        scratch_shapes=[pltpu.VMEM((tm, tn), jnp.float32)],
        compiler_params=pltpu.CompilerParams(
            dimension_semantics=("parallel", "parallel", "arbitrary"),
            vmem_limit_bytes=_VMEM_LIMIT),
    )(*operands)

    if (Mp, Np) != (M, N):
        out = out[:M, :N]
    return out


# --------------------------------- main ------------------------------------ #

if __name__ == "__main__":
    key = jax.random.PRNGKey(0)
    kw, kb, kx1, kx2 = jax.random.split(key, 4)

    K, N = 256, 512
    dtype = jnp.bfloat16

    # Deterministic synthetic parameters (Fp8Linear.from_unquant init, hoisted).
    weight = jax.random.normal(kw, (N, K), jnp.float32) * 0.05
    bias = jax.random.normal(kb, (N,), jnp.float32) * 0.1
    qweight_p, w_scale, bias_row, n_out = fp8_linear_init(weight, bias)

    # Plain-JAX reference of the same forward (uses the unpadded quantized weight,
    # whose values/scale are identical to the padded one).
    qweight_ref, w_scale_ref = fp8_quantize(weight)

    def reference(xin, with_bias):
        x32 = xin.astype(jnp.float32)
        am = jnp.maximum(jnp.max(jnp.abs(x32)), EPS)
        s_a = FP8_MAX / am
        qx = jnp.clip(x32 * s_a, FP8_MIN, FP8_MAX).astype(jnp.float8_e4m3fn)
        out = jnp.dot(qx.astype(jnp.float32), qweight_ref.astype(jnp.float32).T) \
              * (1.0 / s_a) * w_scale_ref
        if with_bias:
            out = out + bias
        return out.astype(dtype)

    # 1) decode-shaped batch (M=8), with bias, default tiling
    x1 = (jax.random.normal(kx1, (8, K), jnp.float32) * 0.5).astype(dtype)
    out1 = jax.block_until_ready(
        fp8_linear_forward(x1, qweight_p, w_scale, bias_row, n_out, dtype))
    ref1 = reference(x1, True)
    assert out1.shape == (8, N) and out1.dtype == dtype
    assert jnp.allclose(out1.astype(jnp.float32), ref1.astype(jnp.float32),
                        atol=3e-2, rtol=3e-2), "Pallas output mismatch vs reference (bias)"

    # 2) ragged prefill-shaped batch (M=70 -> padded), no bias, forced 2-step K accumulation
    x2 = (jax.random.normal(kx2, (70, K), jnp.float32) * 0.5).astype(dtype)
    out2 = jax.block_until_ready(
        fp8_linear_forward(x2, qweight_p, w_scale, None, n_out, dtype, block_k=128))
    ref2 = reference(x2, False)
    assert out2.shape == (70, N) and out2.dtype == dtype
    assert jnp.allclose(out2.astype(jnp.float32), ref2.astype(jnp.float32),
                        atol=3e-2, rtol=3e-2), "Pallas output mismatch vs reference (no bias)"

    print("KERNEL_OK")
</pallas_src>

<mosaic_0001>
module attributes {stable_mosaic.version = 11 : i64} {
  func.func @_absmax_kernel(%arg0: i32, %arg1: i32, %arg2: memref<8x256xbf16, #tpu.memory_space<vmem>>, %arg3: memref<1x1xf32, #tpu.memory_space<smem>>, %arg4: memref<8x256xf32, #tpu.memory_space<vmem>>) attributes {dimension_semantics = [#tpu.dimension_semantics<arbitrary>, #tpu.dimension_semantics<arbitrary>], iteration_bounds = array<i64: 1, 1>, scalar_prefetch = 0 : i64, scratch_operands = 1 : i64, tpu.core_type = #tpu.core_type<tc>, window_params = [{transform_indices = @transform_0, window_bounds = array<i64: 8, 256>}, {transform_indices = @transform_1, window_bounds = array<i64: 1, 1>}]} {
    %c0_i32 = arith.constant 0 : i32
    %0 = arith.cmpi eq, %arg0, %c0_i32 : i32
    %c0_i32_0 = arith.constant 0 : i32
    %1 = arith.cmpi eq, %arg1, %c0_i32_0 : i32
    %2 = arith.andi %0, %1 : i1
    %3 = arith.extui %2 : i1 to i32
    %c0_i32_1 = arith.constant 0 : i32
    %4 = arith.cmpi ne, %3, %c0_i32_1 : i32
    scf.if %4 {
      %cst = arith.constant 0.000000e+00 : f32
      %16 = vector.broadcast %cst : f32 to vector<8x256xf32>
      %c0_10 = arith.constant 0 : index
      %c0_11 = arith.constant 0 : index
      %17 = vector.load %arg4[%c0_10, %c0_11] : memref<8x256xf32, #tpu.memory_space<vmem>>, vector<8x256xf32>
      tpu.vector_store %arg4[%c0_10, %c0_11], %16 {strides = array<i32>} : memref<8x256xf32, #tpu.memory_space<vmem>>, vector<8x256xf32>,
    } else {
    }
    %c0 = arith.constant 0 : index
    %c0_2 = arith.constant 0 : index
    %5 = vector.load %arg4[%c0, %c0_2] : memref<8x256xf32, #tpu.memory_space<vmem>>, vector<8x256xf32>
    %c0_3 = arith.constant 0 : index
    %c0_4 = arith.constant 0 : index
    %6 = vector.load %arg2[%c0_3, %c0_4] : memref<8x256xbf16, #tpu.memory_space<vmem>>, vector<8x256xbf16>
    %7 = math.absf %6 : vector<8x256xbf16>
    %8 = arith.extf %7 : vector<8x256xbf16> to vector<8x256xf32>
    %9 = arith.maximumf %5, %8 : vector<8x256xf32>
    %c0_5 = arith.constant 0 : index
    %c0_6 = arith.constant 0 : index
    %10 = vector.load %arg4[%c0_5, %c0_6] : memref<8x256xf32, #tpu.memory_space<vmem>>, vector<8x256xf32>
    tpu.vector_store %arg4[%c0_5, %c0_6], %9 {strides = array<i32>} : memref<8x256xf32, #tpu.memory_space<vmem>>, vector<8x256xf32>,
    %c0_i32_7 = arith.constant 0 : i32
    %11 = arith.cmpi eq, %arg0, %c0_i32_7 : i32
    %c0_i32_8 = arith.constant 0 : i32
    %12 = arith.cmpi eq, %arg1, %c0_i32_8 : i32
    %13 = arith.andi %11, %12 : i1
    %14 = arith.extui %13 : i1 to i32
    %c0_i32_9 = arith.constant 0 : i32
    %15 = arith.cmpi ne, %14, %c0_i32_9 : i32
    scf.if %15 {
      %c0_10 = arith.constant 0 : index
      %c0_11 = arith.constant 0 : index
      %16 = vector.load %arg4[%c0_10, %c0_11] : memref<8x256xf32, #tpu.memory_space<vmem>>, vector<8x256xf32>
      %17 = vector.shape_cast %16 : vector<8x256xf32> to vector<1x8x256xf32>
      %cst = arith.constant dense<0xFF800000> : vector<1xf32>
      %18 = vector.multi_reduction <maximumf>, %17, %cst [1, 2] : vector<1x8x256xf32> to vector<1xf32>
      %19 = vector.shape_cast %18 : vector<1xf32> to vector<1x1x1xf32>
      %20 = vector.extract %19[0, 0, 0] : f32 from vector<1x1x1xf32>
      %c0_12 = arith.constant 0 : index
      %c0_13 = arith.constant 0 : index
      %21 = memref.load %arg3[%c0_12, %c0_13] : memref<1x1xf32, #tpu.memory_space<smem>>
      memref.store %20, %arg3[%c0_12, %c0_13] : memref<1x1xf32, #tpu.memory_space<smem>>
    } else {
    }
    return
  }
  func.func @transform_0(%arg0: i32, %arg1: i32) -> (i32, i32) {
    %c0_i32 = arith.constant 0 : i32
    return %arg0, %arg1 : i32, i32
  }
  func.func @transform_1(%arg0: i32, %arg1: i32) -> (i32, i32) {
    %c0_i32 = arith.constant 0 : i32
    %c0_i32_0 = arith.constant 0 : i32
    %c0_i32_1 = arith.constant 0 : i32
    return %c0_i32, %c0_i32_0 : i32, i32
  }
}

</mosaic_0001>

<bundles_post_ra>
// kernel: tpu_custom_call.1
= control target key start
LH: loop header
LB: loop body
LE: loop exit
PB: predicated region body
PF: predicated region fallthrough
CT: control target
= control target key end

     0   :  { %6 = vsyncpa [#allocation4], 0  ;;  %s145_s0 = inlined_call_operand.hbm [shape: bf16[8,256], index: 0, kind: input, shape index: {}]   ;;  %s146_s1 = inlined_call_operand.hbm [shape: f32[1,1], index: 1, kind: output, shape index: {}]  }
   0x1   :  { %7 = vsyncpa [#allocation5], 0  ;;  %s109_s6 = smov [#allocation3]   ;;  %s73_s10 = scalar_lea.hbm %s145_s0, 128 }
   0x2   :  { %s14_s7 = sshll.u32 %s109_s6, 4  ;;  %p74_p0 = scmp.ne.s32.totalorder %s145_s0, %s73_s10  ;;  %s15_s7 = int_to_ptr.vmem [resolvable:$true] %s14_s7 }
   0x3   :  { %p77_p1 = scmp.lt.u32.totalorder %s73_s10, %s145_s0 }
   0x5   :  { %p79_p2 = pnand %p77_p1, %p74_p0 }
   0x7   :  { %82 = shalt.err (!%p79_p2)
}
   0x8   :  { %s83_s15 = scalar_lea.vmem %s15_s7, 128  ;;  %p88_p4 = scmp.lt.s32.totalorder %s15_s7, %s15_s7 }
   0x9   :  { %p84_p3 = scmp.ne.s32.totalorder %s15_s7, %s83_s15  ;;  %p89_p5 = scmp.lt.s32.totalorder %s83_s15, %s83_s15 }
   0xb   :  { %p90_p6 = por %p89_p5, %p88_p4 }
   0xd   :  { %p91_p7 = pnand %p90_p6, %p84_p3 }
   0xf   :  { %94 = shalt.err (!%p91_p7)
}
  0x10   :  { %17 = dma.hbm_to_vmem [thread:$0]  %s145_s0, 128, %s15_s7, [#allocation4]  }
  0x11   :  { %105 = dma.done.wait [#allocation4], 128  }
  0x12   :  { %106 = vsyncadd [#allocation4], 4294967168  ;;  %v31_v0 = vld [vmem:[#allocation3] sm:$0xff]  ;;  %s95_s20 = scalar_lea.hbm %s146_s1, 16 }
  0x13   :  { %v32_v1 = vand.u32 2147450879, %v31_v0  ;;  %p96_p8 = scmp.ne.s32.totalorder %s146_s1, %s95_s20  ;;  %p99_p9 = scmp.lt.u32.totalorder %s95_s20, %s146_s1 }
  0x15   :  { %v33_v2 = vunpack.c.l.bf16 %v32_v1  ;;  %v34_v3 = vunpack.c.h.bf16 %v32_v1  ;;  %p101_p10 = pnand %p99_p9, %p96_p8 }
  0x17   :  { %v35_v4 = vmax.f32 %v33_v2, 0.0  ;;  %v36_v5 = vmax.f32 %v34_v3, 0.0 }
  0x19   :  { %v43_v6 = vmax.f32 %v35_v4, %v36_v5 }
  0x1b   :  { %44 = vmax.xlane.f32.xlu0 %v43_v6 }
  0xa8   :  { %v45_v7 = vpop.xlane.xlu0 %44 }
  0xa9   :  { %v46_v8 = vrot.slane %v45_v7, 4 }
  0xab   :  { %v47_v9 = vmax.f32 %v45_v7, %v46_v8 }
  0xad   :  { %v48_v10 = vrot.slane %v47_v9, 2 }
  0xaf   :  { %v49_v11 = vmax.f32 %v47_v9, %v48_v10 }
  0xb1   :  { %v50_v12 = vrot.slane %v49_v11, 1 }
  0xb3   :  { %v51_v13 = vmax.f32 %v49_v11, %v50_v12 }
  0xb5   :  { %69 = vpush %v51_v13 }
  0xe6   :  { %s70_s18 = spop %69 }
  0xe7   :  { %54 = sst [smem:[#allocation6]] %s70_s18 }
  0xe8   :  { %104 = shalt.err (!%p101_p10)
}
  0xe9   :  { %s110_s25 = smov [#allocation6]  }
  0xea   :  { %62 = dma.smem_to_hbm %s110_s25, 16, %s146_s1, [#allocation5]  }
  0xeb   :  { %107 = dma.done.wait [#allocation5], 16  }
  0xec   :  { %108 = vsyncadd [#allocation5], 4294967280 }
  0xed   :  { %66 = sfence }
  0xee   :  { %67 = vsyncpa [#allocation4], 1 }
  0xef   :  { %68 = vsyncpa [#allocation5], 1 }

</bundles_post_ra>
